<compile_context>
chip_gen: v5e
topology: v5e:2x2
jax: 0.10.0
libtpu: 0.0.40
codegen_flags: <defaults>
</compile_context>

<pallas_src>
import jax
import jax.numpy as jnp
from jax.experimental import pallas as pl
from jax.experimental.pallas import tpu as pltpu

_CHUNK = 512     # in-kernel chunk width (lanes of the transposed compute): keeps the
                 # (H, chunk) f32 intermediates ~16 vregs so the Linear->ReLU chain stays
                 # in registers instead of materializing (H, TM) slabs in VMEM per op.
_SPLIT = 8192    # above this many rows force >=2 grid steps so v7x's 2 TCs both get work


def _round_up(x, m):
    return (x + m - 1) // m * m


def _choose_tm(M, tm_max):
    """Tile size over the fused row axis (multiple of _CHUNK when tiled)."""
    tm_max = max(_CHUNK, _round_up(int(tm_max), _CHUNK))
    if M <= tm_max and M < _SPLIT:
        return M                                  # one exact tile: block dims == array dims
    n_tiles = max(pl.cdiv(M, tm_max), 2)          # balanced tiles, megacore-friendly
    return min(_round_up(pl.cdiv(M, n_tiles), _CHUNK), tm_max)


def _make_kernel(tm, n_chunks):
    ch = tm // n_chunks

    def kernel(x_ref, w1_ref, b1_ref, w2_ref, b2_ref, w3_ref, b3_ref, o_ref):
        # Tiny weights: read once, reused by every chunk (VMEM-resident across the grid).
        w1 = w1_ref[...]        # (H, F)  f32
        b1 = b1_ref[...]        # (H, 1)  f32
        w2 = w2_ref[...]        # (H, H)  f32
        b2 = b2_ref[...]        # (H, 1)  f32
        w3 = w3_ref[...]        # (H, 1)  f32
        b3 = b3_ref[0]          # scalar  (SMEM)

        # Transposed orientation: tile rows live on lanes, features/hidden on sublanes, so
        # the (H, chunk) intermediates are lane-dense and the 1-wide value head becomes a
        # VPU multiply + sublane (XLU) reduce instead of a degenerate N=1 MXU matmul.
        for c in range(n_chunks):                  # static unroll -> static slice offsets
            lo = c * ch
            x_c = x_ref[pl.ds(lo, ch), :]                              # (ch, F) f32
            # layer 1: h1[h, m] = sum_f w1[h, f] * x_c[m, f]
            h1 = jax.lax.dot_general(
                w1, x_c, (((1,), (1,)), ((), ())),
                preferred_element_type=jnp.float32)                    # (H, ch)
            h1 = jnp.maximum(h1 + b1, 0.0)
            # layer 2
            h2 = jnp.dot(w2, h1, preferred_element_type=jnp.float32)   # (H, ch)
            h2 = jnp.maximum(h2 + b2, 0.0)
            # (the extra F.relu(...) in forward() is a mathematical no-op after the ReLU
            #  above, so it is not re-applied)
            # value head (hidden -> 1) + squeeze(-1): lane-dense (1, ch) row
            v = jnp.sum(h2 * w3, axis=0, keepdims=True) + b3
            o_ref[:, pl.ds(lo, ch)] = v.astype(o_ref.dtype)

    return kernel


def object_value_predictor(state, params, *, tm=16384):
    """Fused ObjectValuePredictor forward.

    state : (..., obj_feature_dim) array (streamed as-is; no pad / cast pre-pass).
    params: (w1, b1, w2, b2, w3, b3) in PyTorch nn.Linear layout (weight = (out, in)).
    Returns state.shape[:-1] per-object values in state.dtype.
    """
    w1, b1, w2, b2, w3, b3 = params
    F_dim = int(state.shape[-1])
    H = int(w1.shape[0])
    lead_shape = state.shape[:-1]
    M = 1
    for d in lead_shape:
        M *= int(d)

    if M == 0:                                     # guard: empty leading dims
        return jnp.zeros(lead_shape, state.dtype)

    TM = _choose_tm(M, tm)
    grid = (pl.cdiv(M, TM),)                       # ragged last tile: masked, no jnp.pad
    chunked = (TM > _CHUNK) and (TM % _CHUNK == 0)
    n_chunks = TM // _CHUNK if chunked else 1

    # No pre-pass over the big operand: reshape is metadata-only (contiguous), f32 kept.
    x2d = state.reshape(M, F_dim)
    b1_c = b1.reshape(H, 1)
    b2_c = b2.reshape(H, 1)
    w3_c = w3.reshape(H, 1)
    b3_c = b3.reshape(1)

    # VMEM budget using the *padded* block shapes: the (TM, F) x block lane-pads F -> 128,
    # the (1, TM) output block sublane-pads 1 -> 8; double buffering on the streamed
    # operands; per-chunk f32 intermediates.  Cap at 3/4 of physical VMEM
    # (v5e/v6e: 128 MiB, v7x: 64 MiB; 64 MiB fallback if the query is unavailable).
    in_bytes = jnp.dtype(state.dtype).itemsize
    x_buf = TM * _round_up(F_dim, 128) * in_bytes
    o_buf = 8 * TM * in_bytes
    w_res = (H * _round_up(F_dim, 128) + H * _round_up(H, 128) + 3 * H * 128) * 4
    interm = 6 * H * (TM // n_chunks) * 4
    vmem_need = 2 * x_buf + 2 * o_buf + 2 * w_res + interm + (2 << 20)
    try:
        phys_vmem = int(pltpu.get_tpu_info().vmem_capacity_bytes)
    except Exception:
        phys_vmem = 64 * 1024 * 1024
    vmem_limit = int(min(3 * phys_vmem // 4, max(4 << 20, vmem_need * 5 // 4)))

    flops = 2 * M * (F_dim * H + H * H + H)
    bytes_accessed = (M * F_dim + M) * in_bytes + 4 * int(
        w1.size + w2.size + w3.size + b1.size + b2.size + b3.size)
    cost = pl.CostEstimate(flops=int(flops), transcendentals=0,
                           bytes_accessed=int(bytes_accessed))

    out = pl.pallas_call(
        _make_kernel(TM, n_chunks),
        out_shape=jax.ShapeDtypeStruct((1, M), state.dtype),      # written in state.dtype
        grid=grid,
        in_specs=[
            pl.BlockSpec((TM, F_dim), lambda i: (i, 0)),          # x: streamed per tile
            pl.BlockSpec((H, F_dim), lambda i: (0, 0)),           # w1: VMEM-resident
            pl.BlockSpec((H, 1), lambda i: (0, 0)),               # b1
            pl.BlockSpec((H, H), lambda i: (0, 0)),               # w2
            pl.BlockSpec((H, 1), lambda i: (0, 0)),               # b2
            pl.BlockSpec((H, 1), lambda i: (0, 0)),               # w3 (column for the reduce)
            pl.BlockSpec(memory_space=pltpu.MemorySpace.SMEM),    # b3 scalar
        ],
        out_specs=pl.BlockSpec((1, TM), lambda i: (0, i)),        # lane-dense output rows
        compiler_params=pltpu.CompilerParams(
            dimension_semantics=("parallel",),
            vmem_limit_bytes=vmem_limit),
        cost_estimate=cost,
    )(x2d, w1, b1_c, w2, b2_c, w3_c, b3_c)

    return out.reshape(lead_shape)


def init_params(key, obj_feature_dim, hidden_dim, dtype=jnp.float32):
    """Deterministic synthetic params in PyTorch nn.Linear layout (weight: (out, in))."""
    ks = jax.random.split(key, 6)

    def u(k, shape, fan_in):
        bound = 1.0 / (fan_in ** 0.5)
        return jax.random.uniform(k, shape, dtype, minval=-bound, maxval=bound)

    w1 = u(ks[0], (hidden_dim, obj_feature_dim), obj_feature_dim)
    b1 = u(ks[1], (hidden_dim,), obj_feature_dim)
    w2 = u(ks[2], (hidden_dim, hidden_dim), hidden_dim)
    b2 = u(ks[3], (hidden_dim,), hidden_dim)
    w3 = u(ks[4], (1, hidden_dim), hidden_dim)
    b3 = u(ks[5], (1,), hidden_dim)
    return (w1, b1, w2, b2, w3, b3)


def _reference(state, params):
    """Pure-JAX f32 reference mirroring the PyTorch module exactly."""
    w1, b1, w2, b2, w3, b3 = params
    hi = jax.lax.Precision.HIGHEST
    h = jax.nn.relu(jnp.einsum("...i,oi->...o", state, w1, precision=hi) + b1)
    h = jax.nn.relu(jnp.einsum("...i,oi->...o", h, w2, precision=hi) + b2)
    h = jax.nn.relu(h)                                            # F.relu in forward()
    return jnp.einsum("...i,oi->...o", h, w3, precision=hi)[..., 0] + b3[0]


if __name__ == "__main__":
    obj_feature_dim, hidden_dim = 16, 32
    batch, num_objects = 2, 8

    key = jax.random.PRNGKey(0)
    k_x, k_p, k_x2 = jax.random.split(key, 3)
    state = jax.random.normal(k_x, (batch, num_objects, obj_feature_dim), jnp.float32)
    params = init_params(k_p, obj_feature_dim, hidden_dim)

    out = jax.block_until_ready(object_value_predictor(state, params))
    ref = _reference(state, params)
    assert out.shape == (batch, num_objects), out.shape
    assert jnp.allclose(out, ref, atol=1e-3, rtol=1e-3), "mismatch vs reference (small case)"

    # Also exercise the multi-tile + ragged-last-tile + chunked in-kernel path (small scale).
    state2 = jax.random.normal(k_x2, (5, 500, obj_feature_dim), jnp.float32)
    out2 = jax.block_until_ready(object_value_predictor(state2, params, tm=1024))
    ref2 = _reference(state2, params)
    assert out2.shape == (5, 500), out2.shape
    assert jnp.allclose(out2, ref2, atol=1e-3, rtol=1e-3), "mismatch vs reference (tiled case)"

    print("KERNEL_OK")
</pallas_src>

<mosaic_0001>
module attributes {stable_mosaic.version = 11 : i64} {
  func.func @kernel(%arg0: i32, %arg1: memref<16x16xf32, #tpu.memory_space<vmem>>, %arg2: memref<32x16xf32, #tpu.memory_space<vmem>>, %arg3: memref<32x1xf32, #tpu.memory_space<vmem>>, %arg4: memref<32x32xf32, #tpu.memory_space<vmem>>, %arg5: memref<32x1xf32, #tpu.memory_space<vmem>>, %arg6: memref<32x1xf32, #tpu.memory_space<vmem>>, %arg7: memref<1xf32, #tpu.memory_space<smem>>, %arg8: memref<1x16xf32, #tpu.memory_space<vmem>>) attributes {dimension_semantics = [#tpu.dimension_semantics<parallel>], iteration_bounds = array<i64: 1>, scalar_prefetch = 0 : i64, scratch_operands = 0 : i64, tpu.core_type = #tpu.core_type<tc>, window_params = [{transform_indices = @transform_0, window_bounds = array<i64: 16, 16>}, {pipeline_mode = #tpu.pipeline_mode<synchronous>, transform_indices = @transform_1, window_bounds = array<i64: 32, 16>}, {pipeline_mode = #tpu.pipeline_mode<synchronous>, transform_indices = @transform_2, window_bounds = array<i64: 32, 1>}, {pipeline_mode = #tpu.pipeline_mode<synchronous>, transform_indices = @transform_3, window_bounds = array<i64: 32, 32>}, {pipeline_mode = #tpu.pipeline_mode<synchronous>, transform_indices = @transform_4, window_bounds = array<i64: 32, 1>}, {pipeline_mode = #tpu.pipeline_mode<synchronous>, transform_indices = @transform_5, window_bounds = array<i64: 32, 1>}, {transform_indices = @transform_6, window_bounds = array<i64: 1>}, {transform_indices = @transform_7, window_bounds = array<i64: 1, 16>}]} {
    %c0 = arith.constant 0 : index
    %c0_0 = arith.constant 0 : index
    %0 = vector.load %arg2[%c0, %c0_0] : memref<32x16xf32, #tpu.memory_space<vmem>>, vector<32x16xf32>
    %c0_1 = arith.constant 0 : index
    %c0_2 = arith.constant 0 : index
    %1 = vector.load %arg3[%c0_1, %c0_2] : memref<32x1xf32, #tpu.memory_space<vmem>>, vector<32x1xf32>
    %c0_3 = arith.constant 0 : index
    %c0_4 = arith.constant 0 : index
    %2 = vector.load %arg4[%c0_3, %c0_4] : memref<32x32xf32, #tpu.memory_space<vmem>>, vector<32x32xf32>
    %c0_5 = arith.constant 0 : index
    %c0_6 = arith.constant 0 : index
    %3 = vector.load %arg5[%c0_5, %c0_6] : memref<32x1xf32, #tpu.memory_space<vmem>>, vector<32x1xf32>
    %c0_7 = arith.constant 0 : index
    %c0_8 = arith.constant 0 : index
    %4 = vector.load %arg6[%c0_7, %c0_8] : memref<32x1xf32, #tpu.memory_space<vmem>>, vector<32x1xf32>
    %c0_9 = arith.constant 0 : index
    %5 = memref.load %arg7[%c0_9] : memref<1xf32, #tpu.memory_space<smem>>
    %c0_10 = arith.constant 0 : index
    %c0_11 = arith.constant 0 : index
    %6 = vector.load %arg1[%c0_10, %c0_11] : memref<16x16xf32, #tpu.memory_space<vmem>>, vector<16x16xf32>
    %cst = arith.constant dense<0.000000e+00> : vector<32x16xf32>
    %7 = tpu.matmul %0, %6, %cst {dimension_numbers = #tpu.dot_dimension_numbers<[1], [1], [0], [0], [0, 0, 1, 0], [], []>} : vector<32x16xf32>, vector<16x16xf32>, vector<32x16xf32> -> vector<32x16xf32>
    %8 = vector.broadcast %1 : vector<32x1xf32> to vector<32x16xf32>
    %9 = arith.addf %7, %8 : vector<32x16xf32>
    %cst_12 = arith.constant 0.000000e+00 : f32
    %10 = vector.broadcast %cst_12 : f32 to vector<32x16xf32>
    %11 = arith.maximumf %9, %10 : vector<32x16xf32>
    %cst_13 = arith.constant dense<0.000000e+00> : vector<32x16xf32>
    %12 = tpu.matmul %2, %11, %cst_13 {dimension_numbers = #tpu.dot_dimension_numbers<[1], [0], [0], [1], [0, 0, 1, 1], [], []>} : vector<32x32xf32>, vector<32x16xf32>, vector<32x16xf32> -> vector<32x16xf32>
    %13 = vector.broadcast %3 : vector<32x1xf32> to vector<32x16xf32>
    %14 = arith.addf %12, %13 : vector<32x16xf32>
    %cst_14 = arith.constant 0.000000e+00 : f32
    %15 = vector.broadcast %cst_14 : f32 to vector<32x16xf32>
    %16 = arith.maximumf %14, %15 : vector<32x16xf32>
    %17 = vector.broadcast %4 : vector<32x1xf32> to vector<32x16xf32>
    %18 = arith.mulf %16, %17 : vector<32x16xf32>
    %cst_15 = arith.constant dense<0.000000e+00> : vector<16xf32>
    %19 = vector.multi_reduction <add>, %18, %cst_15 [0] : vector<32x16xf32> to vector<16xf32>
    %20 = vector.shape_cast %19 : vector<16xf32> to vector<1x16xf32>
    %21 = vector.broadcast %5 : f32 to vector<1x16xf32>
    %22 = arith.addf %20, %21 : vector<1x16xf32>
    %c0_16 = arith.constant 0 : index
    %c0_17 = arith.constant 0 : index
    %23 = vector.load %arg8[%c0_16, %c0_17] : memref<1x16xf32, #tpu.memory_space<vmem>>, vector<1x16xf32>
    tpu.vector_store %arg8[%c0_16, %c0_17], %22 {strides = array<i32>} : memref<1x16xf32, #tpu.memory_space<vmem>>, vector<1x16xf32>,
    return
  }
  func.func @transform_0(%arg0: i32) -> (i32, i32) {
    %c0_i32 = arith.constant 0 : i32
    %c0_i32_0 = arith.constant 0 : i32
    return %arg0, %c0_i32 : i32, i32
  }
  func.func @transform_1(%arg0: i32) -> (i32, i32) {
    %c0_i32 = arith.constant 0 : i32
    %c0_i32_0 = arith.constant 0 : i32
    %c0_i32_1 = arith.constant 0 : i32
    return %c0_i32, %c0_i32_0 : i32, i32
  }
  func.func @transform_2(%arg0: i32) -> (i32, i32) {
    %c0_i32 = arith.constant 0 : i32
    %c0_i32_0 = arith.constant 0 : i32
    %c0_i32_1 = arith.constant 0 : i32
    return %c0_i32, %c0_i32_0 : i32, i32
  }
  func.func @transform_3(%arg0: i32) -> (i32, i32) {
    %c0_i32 = arith.constant 0 : i32
    %c0_i32_0 = arith.constant 0 : i32
    %c0_i32_1 = arith.constant 0 : i32
    return %c0_i32, %c0_i32_0 : i32, i32
  }
  func.func @transform_4(%arg0: i32) -> (i32, i32) {
    %c0_i32 = arith.constant 0 : i32
    %c0_i32_0 = arith.constant 0 : i32
    %c0_i32_1 = arith.constant 0 : i32
    return %c0_i32, %c0_i32_0 : i32, i32
  }
  func.func @transform_5(%arg0: i32) -> (i32, i32) {
    %c0_i32 = arith.constant 0 : i32
    %c0_i32_0 = arith.constant 0 : i32
    %c0_i32_1 = arith.constant 0 : i32
    return %c0_i32, %c0_i32_0 : i32, i32
  }
  func.func @transform_6(%arg0: i32) -> i32 {
    %c0_i32 = arith.constant 0 : i32
    %c0_i32_0 = arith.constant 0 : i32
    return %c0_i32 : i32
  }
  func.func @transform_7(%arg0: i32) -> (i32, i32) {
    %c0_i32 = arith.constant 0 : i32
    %c0_i32_0 = arith.constant 0 : i32
    return %c0_i32, %arg0 : i32, i32
  }
}

</mosaic_0001>

<bundles_post_ra>
// kernel: tpu_custom_call.1
= control target key start
LH: loop header
LB: loop body
LE: loop exit
PB: predicated region body
PF: predicated region fallthrough
CT: control target
= control target key end

     0   :  { %vm71_vm0 = vcmask 130048   ;;  %v293_v2 = vmov 0   ;;  %s419_s0 = inlined_call_operand.vmem [shape: f32[16,16], index: 0, kind: input, shape index: {}]   ;;  %s420_s1 = inlined_call_operand.vmem [shape: f32[32,16], index: 1, kind: input, shape index: {}]   ;;  %s421_s2 = inlined_call_operand.vmem [shape: f32[32,1], index: 2, kind: input, shape index: {}]   ;;  %s422_s3 = inlined_call_operand.vmem [shape: f32[32,32], index: 3, kind: input, shape index: {}]   ;;  %s423_s4 = inlined_call_operand.vmem [shape: f32[32,1], index: 4, kind: input, shape index: {}]   ;;  %s424_s5 = inlined_call_operand.vmem [shape: f32[32,1], index: 5, kind: input, shape index: {}]   ;;  %s425_s6 = inlined_call_operand.<no memory space> [shape: f32[1], index: 6, kind: input, shape index: {}]   ;;  %s426_s7 = inlined_call_operand.hbm [shape: f32[1,16], index: 7, kind: output, shape index: {}]  }
   0x1   :  { %v50_v0 = vld [vmem:[%s419_s0 + $0x8] sm:$0xff]  ;;  %v35_v1 = vld [vmem:[%s421_s2 + $0x18] sm:$0xff]  ;;  %264 = vset.pattern.permute.xlu0 %v293_v2  ;;  %v49_v4 = vld [vmem:[%s419_s0] sm:$0xff]  ;;  %265 = vset.pattern.permute.xlu1 %v293_v2 }
   0x2   :  { %256 = vmatpush.xpose.msk.msra.mxu2 %vm71_vm0, %v50_v0  ;;  %v33_v3 = vld [vmem:[%s421_s2 + $0x8] sm:$0xff]  ;;  %68 = vperm.xlu0 %264, %v35_v1  }
   0x3   :  { %246 = vmatpush.xpose.msk.msra.mxu0 %vm71_vm0, %v50_v0  ;;  %266 = vset.pattern.permute.xlu2 %v293_v2 }
   0x4   :  { %58 = vperm.xlu1 %265, %v33_v3  }
   0x5   :  { %13 = vsyncpa [#allocation4], 0  ;;  %v30_v5 = vld [vmem:[%s420_s1 + $0x10] sm:$0xff]  ;;  %v28_v6 = vld [vmem:[%s420_s1] sm:$0xff]  ;;  %vm143_vm1 = vcmask 261120   ;;  %s294_s17 = smov [#allocation3]  }
   0x6   :  { %257 = vmatpush.xpose.msk.msra.mxu2 %vm71_vm0, %v49_v4  ;;  %v34_v7 = vld [vmem:[%s421_s2 + $0x10] sm:$0xff]  ;;  %v32_v8 = vld [vmem:[%s421_s2] sm:$0xff]  ;;  %v31_v9 = vld [vmem:[%s420_s1 + $0x18] sm:$0xff]  ;;  %s235_s18 = sshll.u32 %s294_s17, 4  ;;  %s237_s21 = sshll.u32 %s426_s7, 4  ;;  %vm228_vm2 = vcmask 122880   ;;  %s236_s18 = int_to_ptr.vmem [resolvable:$true] %s235_s18  ;;  %s238_s21 = int_to_ptr.hbm [resolvable:$true] %s237_s21 }
   0x7   :  { %247 = vmatpush.xpose.msk.msra.mxu0 %vm71_vm0, %v49_v4  ;;  %v29_v10 = vld [vmem:[%s420_s1 + $0x8] sm:$0xff]  ;;  %v42_v11 = vld [vmem:[%s423_s4 + $0x10] sm:$0xff]  ;;  %v43_v12 = vld [vmem:[%s423_s4 + $0x18] sm:$0xff] }
   0x8   :  { %v45_v13 = vld [vmem:[%s424_s5 + $0x8] sm:$0xff]  ;;  %v46_v14 = vld [vmem:[%s424_s5 + $0x10] sm:$0xff]  ;;  %v40_v15 = vld [vmem:[%s423_s4] sm:$0xff] }
   0x9   :  { %250 = vmatmul.msk.f32.vlgmr.msra.gmra.mxu2 %vm71_vm0, %v30_v5  ;;  %125 = vperm.xlu2 %266, %v40_v15   ;;  %v41_v16 = vld [vmem:[%s423_s4 + $0x8] sm:$0xff]  ;;  %v44_v21 = vld [vmem:[%s424_s5] sm:$0xff]  ;;  %v47_v29 = vld [vmem:[%s424_s5 + $0x18] sm:$0xff] }
   0xa   :  { %248 = vmatmul.msk.f32.vlgmr.msra.gmra.mxu0 %vm71_vm0, %v28_v6  ;;  %63 = vperm.xlu0 %264, %v34_v7   ;;  %v36_v35 = vld [vmem:[%s422_s3] sm:$0xff]  ;;  %v38_v36 = vld [vmem:[%s422_s3 + $0x10] sm:$0xff]  ;;  %v37_v37 = vld [vmem:[%s422_s3 + $0x8] sm:$0xff] }
   0xb   :  { %v39_v38 = vld [vmem:[%s422_s3 + $0x18] sm:$0xff] }
   0xc   :  { %53 = vperm.xlu1 %265, %v32_v8  }
  0x11   :  { %251 = vmatmul.msk.f32.gmra.mxu2 %vm71_vm0, %v31_v9  ;;  %130 = vperm.xlu2 %266, %v41_v16  }
  0x12   :  { %249 = vmatmul.msk.f32.gmra.mxu0 %vm71_vm0, %v29_v10  ;;  %135 = vperm.xlu0 %264, %v42_v11   ;;  %v226_v11 = vstv %s425_s6 }
  0x14   :  { %140 = vperm.xlu1 %265, %v43_v12  }
  0x19   :  { %191 = vperm.xlu2 %266, %v44_v21  }
  0x1a   :  { %196 = vperm.xlu0 %264, %v45_v13  }
  0x1c   :  { %201 = vperm.xlu1 %265, %v46_v14  }
  0x21   :  { %206 = vperm.xlu2 %266, %v47_v29  }
  0x63   :  { %v126_v39 = vpop.permute.xlu2 %125 }
  0x6b   :  { %v131_v40 = vpop.permute.xlu2 %130 }
  0x73   :  { %v192_v48 = vpop.permute.xlu2 %191 }
  0x74   :  { %v69_v17 = vpop.permute.xlu0 %68 }
  0x76   :  { %v59_v20 = vpop.permute.xlu1 %58 }
  0x7b   :  { %v207_v0 = vpop.permute.xlu2 %206 }
  0x7c   :  { %v64_v22 = vpop.permute.xlu0 %63 }
  0x7e   :  { %v54_v30 = vpop.permute.xlu1 %53 }
  0x84   :  { %v136_v42 = vpop.permute.xlu0 %135 }
  0x86   :  { %v141_v44 = vpop.permute.xlu1 %140 }
  0x87   :  { %v107_v18 = vpop.f32.mrf.mxu0 }
  0x88   :  { %v108_v31 = vadd.f32 %v107_v18, %v54_v30 }
  0x8a   :  { %v119_v34 = vmax.f32 %v108_v31, 0.0 }
  0x8c   :  { %v113_v19 = vpop.f32.mrf.mxu2  ;;  %v197_v54 = vpop.permute.xlu0 %196 }
  0x8d   :  { %v114_v25 = vadd.f32 %v113_v19, %v64_v22 }
  0x8e   :  { %v202_v56 = vpop.permute.xlu1 %201 }
  0x8f   :  { %v110_v23 = vpop.f32.mrf.mxu0  ;;  %v121_v32 = vmax.f32 %v114_v25, 0.0 }
  0x90   :  { %v111_v27 = vadd.f32 %v110_v23, %v59_v20 }
  0x92   :  { %v120_v33 = vmax.f32 %v111_v27, 0.0 }
  0x94   :  { %v116_v24 = vpop.f32.mrf.mxu2 }
  0x95   :  { %v117_v26 = vadd.f32 %v116_v24, %v69_v17 }
  0x97   :  { %v122_v28 = vmax.f32 %v117_v26, 0.0 }
  0x99   :  { %168 = vmatpush.msra.mxu1 %v122_v28  ;;  %258 = vmatpush.msra.mxu3 %v122_v28 }
  0x9b   :  { %169 = vmatpush.msra.mxu1 %v121_v32  ;;  %259 = vmatpush.msra.mxu3 %v121_v32 }
  0x9d   :  { %170 = vmatpush.msra.mxu1 %v120_v33  ;;  %260 = vmatpush.msra.mxu3 %v120_v33 }
  0x9f   :  { %171 = vmatpush.msra.mxu1 %v119_v34  ;;  %261 = vmatpush.msra.mxu3 %v119_v34 }
  0xa0   :  { %252 = vmatmul.msk.f32.vlgmr.msra.gmra.mxu1 %vm143_vm1, %v36_v35  ;;  %254 = vmatmul.msk.f32.vlgmr.msra.gmra.mxu3 %vm143_vm1, %v38_v36 }
  0xa8   :  { %253 = vmatmul.msk.f32.gmra.mxu1 %vm143_vm1, %v37_v37  ;;  %255 = vmatmul.msk.f32.gmra.mxu3 %vm143_vm1, %v39_v38 }
 0x11d   :  { %v173_v41 = vpop.f32.mrf.mxu1 }
 0x11e   :  { %v174_v43 = vadd.f32 %v173_v41, %v126_v39 }
 0x120   :  { %v185_v46 = vmax.f32 %v174_v43, 0.0 }
 0x122   :  { %v209_v51 = vmul.f32 %v192_v48, %v185_v46 }
 0x123   :  { %v179_v45 = vpop.f32.mrf.mxu3 }
 0x124   :  { %v180_v47 = vadd.f32 %v179_v45, %v136_v42  ;;  %v213_v58 = vsel %vm71_vm0, %v209_v51, 0.0 }
 0x125   :  { %v176_v49 = vpop.f32.mrf.mxu1 }
 0x126   :  { %v177_v50 = vadd.f32 %v176_v49, %v131_v40  ;;  %v187_v52 = vmax.f32 %v180_v47, 0.0 }
 0x128   :  { %v186_v53 = vmax.f32 %v177_v50, 0.0  ;;  %v211_v59 = vmul.f32 %v202_v56, %v187_v52 }
 0x12a   :  { %v210_v55 = vmul.f32 %v197_v54, %v186_v53  ;;  %v216_v1 = vsel %vm71_vm0, %v211_v59, 0.0 }
 0x12b   :  { %v182_v57 = vpop.f32.mrf.mxu3 }
 0x12c   :  { %v214_v60 = vsel %vm71_vm0, %v210_v55, 0.0  ;;  %v183_v61 = vadd.f32 %v182_v57, %v141_v44 }
 0x12d   :  { %v215_v62 = vadd.f32 %v214_v60, %v213_v58 }
 0x12e   :  { %v188_v63 = vmax.f32 %v183_v61, 0.0 }
 0x12f   :  { %v217_v3 = vadd.f32 %v216_v1, %v215_v62 }
 0x130   :  { %v212_v2 = vmul.f32 %v207_v0, %v188_v63 }
 0x132   :  { %v218_v4 = vsel %vm71_vm0, %v212_v2, 0.0 }
 0x133   :  { %v219_v5 = vadd.f32 %v218_v4, %v217_v3 }
 0x135   :  { %v220_v6 = vrot.slane %v219_v5, 4 }
 0x137   :  { %v221_v7 = vadd.f32 %v220_v6, %v219_v5 }
 0x139   :  { %v222_v8 = vrot.slane %v221_v7, 2 }
 0x13b   :  { %v223_v9 = vadd.f32 %v222_v8, %v221_v7 }
 0x13d   :  { %v224_v10 = vrot.slane %v223_v9, 1 }
 0x13f   :  { %v225_v12 = vadd.f32 %v224_v10, %v223_v9 }
 0x141   :  { %v227_v13 = vadd.f32 %v226_v11, %v225_v12 }
 0x143   :  { %229 = vst.msk [vmem:[#allocation3] sm:$0x1] %vm228_vm2, %v227_v13 }
 0x144   :  { %240 = dma.vmem_to_hbm [thread:$0]  %s236_s18, 16, %s238_s21, [#allocation4]  }
 0x145   :  { %291 = dma.done.wait [#allocation4], 16  }
 0x146   :  { %292 = vsyncadd [#allocation4], 4294967280 }
 0x147   :  { %245 = vsyncpa [#allocation4], 1 }

</bundles_post_ra>
